<compile_context>
chip_gen: v6e
topology: v6e:2x2x1
jax: 0.10.0
libtpu: 0.0.40
codegen_flags: <defaults>
</compile_context>

<pallas_src>
import jax
import jax.numpy as jnp
from jax.experimental import pallas as pl
from jax.experimental.pallas import tpu as pltpu

NUM_GENDER = 2
NUM_AGE = 61
NUM_OCCUPATION = 21
NUM_ZIPCODE = 795
EMB_DIM = 10

# Vocab sizes padded to multiples of 128 so MXU contraction dims / lane dims
# are clean and every table block has an identical layout.
PAD_GENDER = 128
PAD_AGE = 128
PAD_OCC = 128
PAD_ZIP = 896


def _round_up(n, m):
    return ((n + m - 1) // m) * m


def _onehot_dot(idx_row, tblT):
    """Gather via one-hot matmul in transposed orientation.

    idx_row : (1, TB) int32, batch on the lane axis.
    tblT    : (D, V) f32, per-feature weight / total already folded in.
    returns : (D, TB) f32.
    """
    V = tblT.shape[1]
    TB = idx_row.shape[1]
    vocab_iota = jax.lax.broadcasted_iota(jnp.int32, (V, TB), 0)
    # Indices are lane-major; the compare broadcasts along sublanes only.
    onehot = (vocab_iota == idx_row).astype(jnp.float32)          # (V, TB)
    # f32 x exact-0/1 one-hot matmul == exact gather of table values.
    return jnp.dot(tblT, onehot, preferred_element_type=jnp.float32)


def user_100k_kernel(xT_ref, g_ref, a_ref, o_ref, z_ref, out_ref):
    # xT_ref : (4, TB) int32, rows = [age, gender, occupation, area]
    # g_ref  : (D, PAD_GENDER) f32 (only cols 0,1 meaningful)
    # a_ref  : (D, PAD_AGE) f32 ; o_ref : (D, PAD_OCC) ; z_ref : (D, PAD_ZIP)
    #          -- all pre-scaled by (feature_weight / total_weight)
    # out_ref: (D, TB) f32, lane-dense
    age_idx = xT_ref[0:1, :]
    gender_idx = xT_ref[1:2, :]
    occ_idx = xT_ref[2:3, :]
    area_idx = xT_ref[3:4, :]

    # Gender (V=2): exact arithmetic select instead of an MXU pass.
    g0 = g_ref[:, 0:1]                                            # (D, 1)
    g1 = g_ref[:, 1:2]                                            # (D, 1)
    m = (gender_idx == 1).astype(jnp.float32)                     # (1, TB)
    acc = g0 * (1.0 - m) + g1 * m                                 # (D, TB)

    # Remaining features: pre-scaled (D, V) tables x (V, TB) one-hots,
    # accumulated in f32.
    acc = acc + _onehot_dot(age_idx, a_ref[...])
    acc = acc + _onehot_dot(occ_idx, o_ref[...])
    acc = acc + _onehot_dot(area_idx, z_ref[...])

    out_ref[...] = acc.astype(out_ref.dtype)


def _prep_table(tbl, scale, v_pad):
    """(V, D) table -> (D, v_pad) f32, scaled by per-dim `scale`, zero-padded."""
    tblT = jnp.transpose(tbl.astype(jnp.float32)) * scale[:, None]  # (D, V)
    pad = v_pad - tblT.shape[1]
    if pad:
        tblT = jnp.pad(tblT, ((0, 0), (0, pad)))
    return tblT


def user_100k_forward(x, gender_tbl, age_tbl, occ_tbl, area_tbl,
                      gender_w, age_w, occ_w, area_w, *, max_block_b=512):
    """x: (B, 6) integer user features. Returns (B, EMB_DIM) f32."""
    B = x.shape[0]
    block_b = min(max_block_b, _round_up(max(B, 1), 128))  # multiple of 128
    b_pad = _round_up(max(B, 1), block_b)

    # Only the 4 used feature columns, transposed so batch is the lane axis.
    xT = jnp.transpose(x[:, 2:6].astype(jnp.int32))               # (4, B)
    if b_pad != B:
        xT = jnp.pad(xT, ((0, 0), (0, b_pad - B)))                # pad idx 0 (in-range)

    gw = gender_w.astype(jnp.float32)
    aw = age_w.astype(jnp.float32)
    ow = occ_w.astype(jnp.float32)
    zw = area_w.astype(jnp.float32)
    inv_total = 1.0 / (gw + aw + ow + zw)                         # (D,)

    # Fold per-feature weight and the final divide into the tables once.
    g_t = _prep_table(gender_tbl, gw * inv_total, PAD_GENDER)     # (D, 128)
    a_t = _prep_table(age_tbl, aw * inv_total, PAD_AGE)           # (D, 128)
    o_t = _prep_table(occ_tbl, ow * inv_total, PAD_OCC)           # (D, 128)
    z_t = _prep_table(area_tbl, zw * inv_total, PAD_ZIP)          # (D, 896)

    grid = (b_pad // block_b,)
    out_t = pl.pallas_call(
        user_100k_kernel,
        out_shape=jax.ShapeDtypeStruct((EMB_DIM, b_pad), jnp.float32),
        grid_spec=pl.GridSpec(
            grid=grid,
            in_specs=[
                pl.BlockSpec((4, block_b), lambda i: (0, i)),
                pl.BlockSpec((EMB_DIM, PAD_GENDER), lambda i: (0, 0)),
                pl.BlockSpec((EMB_DIM, PAD_AGE), lambda i: (0, 0)),
                pl.BlockSpec((EMB_DIM, PAD_OCC), lambda i: (0, 0)),
                pl.BlockSpec((EMB_DIM, PAD_ZIP), lambda i: (0, 0)),
            ],
            out_specs=pl.BlockSpec((EMB_DIM, block_b), lambda i: (0, i)),
        ),
        compiler_params=pltpu.CompilerParams(
            dimension_semantics=("parallel",)),
    )(xT, g_t, a_t, o_t, z_t)

    return jnp.transpose(out_t[:, :B])                            # (B, D)


def _reference(x, gender_tbl, age_tbl, occ_tbl, area_tbl,
               gender_w, age_w, occ_w, area_w):
    gender_emb = gender_tbl[x[:, 3]] * gender_w
    age_emb = age_tbl[x[:, 2]] * age_w
    occ_emb = occ_tbl[x[:, 4]] * occ_w
    area_emb = area_tbl[x[:, 5]] * area_w
    total = gender_w + age_w + occ_w + area_w
    return (gender_emb + age_emb + occ_emb + area_emb) / total


if __name__ == "__main__":
    key = jax.random.PRNGKey(0)
    k_g, k_a, k_o, k_z, k_x = jax.random.split(key, 5)

    # Deterministic parameter init: embedding tables ~ N(0,1) (like
    # torch.nn.Embedding), per-feature weights = ones (like the Parameters).
    gender_tbl = jax.random.normal(k_g, (NUM_GENDER, EMB_DIM), jnp.float32)
    age_tbl = jax.random.normal(k_a, (NUM_AGE, EMB_DIM), jnp.float32)
    occ_tbl = jax.random.normal(k_o, (NUM_OCCUPATION, EMB_DIM), jnp.float32)
    area_tbl = jax.random.normal(k_z, (NUM_ZIPCODE, EMB_DIM), jnp.float32)
    gender_w = jnp.ones((EMB_DIM,), jnp.float32)
    age_w = jnp.ones((EMB_DIM,), jnp.float32)
    occ_w = jnp.ones((EMB_DIM,), jnp.float32)
    area_w = jnp.ones((EMB_DIM,), jnp.float32)

    # Example input: batch of 8 user feature rows (B, 6) int32.
    B = 8
    k1, k2, k3, k4 = jax.random.split(k_x, 4)
    x = jnp.zeros((B, 6), jnp.int32)
    x = x.at[:, 2].set(jax.random.randint(k1, (B,), 0, NUM_AGE))
    x = x.at[:, 3].set(jax.random.randint(k2, (B,), 0, NUM_GENDER))
    x = x.at[:, 4].set(jax.random.randint(k3, (B,), 0, NUM_OCCUPATION))
    x = x.at[:, 5].set(jax.random.randint(k4, (B,), 0, NUM_ZIPCODE))

    out = user_100k_forward(x, gender_tbl, age_tbl, occ_tbl, area_tbl,
                            gender_w, age_w, occ_w, area_w)
    out = jax.block_until_ready(out)

    ref = _reference(x, gender_tbl, age_tbl, occ_tbl, area_tbl,
                     gender_w, age_w, occ_w, area_w)
    assert out.shape == (B, EMB_DIM)
    assert jnp.allclose(out, ref, atol=1e-5, rtol=1e-5)
    print("KERNEL_OK")
</pallas_src>

<mosaic_0001>
module attributes {stable_mosaic.version = 11 : i64} {
  func.func @user_100k_kernel(%arg0: i32, %arg1: memref<4x128xi32, #tpu.memory_space<vmem>>, %arg2: memref<10x128xf32, #tpu.memory_space<vmem>>, %arg3: memref<10x128xf32, #tpu.memory_space<vmem>>, %arg4: memref<10x128xf32, #tpu.memory_space<vmem>>, %arg5: memref<10x896xf32, #tpu.memory_space<vmem>>, %arg6: memref<10x128xf32, #tpu.memory_space<vmem>>) attributes {dimension_semantics = [#tpu.dimension_semantics<parallel>], iteration_bounds = array<i64: 1>, scalar_prefetch = 0 : i64, scratch_operands = 0 : i64, tpu.core_type = #tpu.core_type<tc>, window_params = [{transform_indices = @transform_0, window_bounds = array<i64: 4, 128>}, {pipeline_mode = #tpu.pipeline_mode<synchronous>, transform_indices = @transform_1, window_bounds = array<i64: 10, 128>}, {pipeline_mode = #tpu.pipeline_mode<synchronous>, transform_indices = @transform_2, window_bounds = array<i64: 10, 128>}, {pipeline_mode = #tpu.pipeline_mode<synchronous>, transform_indices = @transform_3, window_bounds = array<i64: 10, 128>}, {pipeline_mode = #tpu.pipeline_mode<synchronous>, transform_indices = @transform_4, window_bounds = array<i64: 10, 896>}, {transform_indices = @transform_5, window_bounds = array<i64: 10, 128>}]} {
    %c0 = arith.constant 0 : index
    %c0_0 = arith.constant 0 : index
    %0 = vector.load %arg1[%c0, %c0_0] : memref<4x128xi32, #tpu.memory_space<vmem>>, vector<1x128xi32>
    %c1 = arith.constant 1 : index
    %c0_1 = arith.constant 0 : index
    %1 = vector.load %arg1[%c1, %c0_1] : memref<4x128xi32, #tpu.memory_space<vmem>>, vector<1x128xi32>
    %c2 = arith.constant 2 : index
    %c0_2 = arith.constant 0 : index
    %2 = vector.load %arg1[%c2, %c0_2] : memref<4x128xi32, #tpu.memory_space<vmem>>, vector<1x128xi32>
    %c3 = arith.constant 3 : index
    %c0_3 = arith.constant 0 : index
    %3 = vector.load %arg1[%c3, %c0_3] : memref<4x128xi32, #tpu.memory_space<vmem>>, vector<1x128xi32>
    %c0_4 = arith.constant 0 : index
    %c0_5 = arith.constant 0 : index
    %4 = vector.load %arg2[%c0_4, %c0_5] : memref<10x128xf32, #tpu.memory_space<vmem>>, vector<10x1xf32>
    %c0_6 = arith.constant 0 : index
    %c1_7 = arith.constant 1 : index
    %5 = vector.load %arg2[%c0_6, %c1_7] : memref<10x128xf32, #tpu.memory_space<vmem>>, vector<10x1xf32>
    %c1_i32 = arith.constant 1 : i32
    %6 = vector.broadcast %c1_i32 : i32 to vector<1x128xi32>
    %7 = arith.cmpi eq, %1, %6 : vector<1x128xi32>
    %8 = arith.extui %7 : vector<1x128xi1> to vector<1x128xi32>
    %9 = arith.sitofp %8 : vector<1x128xi32> to vector<1x128xf32>
    %cst = arith.constant 1.000000e+00 : f32
    %10 = vector.broadcast %cst : f32 to vector<1x128xf32>
    %11 = arith.subf %10, %9 : vector<1x128xf32>
    %12 = vector.broadcast %4 : vector<10x1xf32> to vector<10x128xf32>
    %13 = vector.broadcast %11 : vector<1x128xf32> to vector<10x128xf32>
    %14 = arith.mulf %12, %13 : vector<10x128xf32>
    %15 = vector.broadcast %5 : vector<10x1xf32> to vector<10x128xf32>
    %16 = vector.broadcast %9 : vector<1x128xf32> to vector<10x128xf32>
    %17 = arith.mulf %15, %16 : vector<10x128xf32>
    %18 = arith.addf %14, %17 : vector<10x128xf32>
    %c0_8 = arith.constant 0 : index
    %c0_9 = arith.constant 0 : index
    %19 = vector.load %arg3[%c0_8, %c0_9] : memref<10x128xf32, #tpu.memory_space<vmem>>, vector<10x128xf32>
    %20 = tpu.iota {dimensions = array<i32: 0>} : vector<128x128xi32>
    %21 = vector.broadcast %0 : vector<1x128xi32> to vector<128x128xi32>
    %22 = arith.cmpi eq, %20, %21 : vector<128x128xi32>
    %23 = arith.extui %22 : vector<128x128xi1> to vector<128x128xi32>
    %24 = arith.sitofp %23 : vector<128x128xi32> to vector<128x128xf32>
    %cst_10 = arith.constant dense<0.000000e+00> : vector<10x128xf32>
    %25 = tpu.matmul %19, %24, %cst_10 {dimension_numbers = #tpu.dot_dimension_numbers<[1], [0], [0], [1], [0, 0, 1, 1], [], []>} : vector<10x128xf32>, vector<128x128xf32>, vector<10x128xf32> -> vector<10x128xf32>
    %26 = arith.addf %18, %25 : vector<10x128xf32>
    %c0_11 = arith.constant 0 : index
    %c0_12 = arith.constant 0 : index
    %27 = vector.load %arg4[%c0_11, %c0_12] : memref<10x128xf32, #tpu.memory_space<vmem>>, vector<10x128xf32>
    %28 = tpu.iota {dimensions = array<i32: 0>} : vector<128x128xi32>
    %29 = vector.broadcast %2 : vector<1x128xi32> to vector<128x128xi32>
    %30 = arith.cmpi eq, %28, %29 : vector<128x128xi32>
    %31 = arith.extui %30 : vector<128x128xi1> to vector<128x128xi32>
    %32 = arith.sitofp %31 : vector<128x128xi32> to vector<128x128xf32>
    %cst_13 = arith.constant dense<0.000000e+00> : vector<10x128xf32>
    %33 = tpu.matmul %27, %32, %cst_13 {dimension_numbers = #tpu.dot_dimension_numbers<[1], [0], [0], [1], [0, 0, 1, 1], [], []>} : vector<10x128xf32>, vector<128x128xf32>, vector<10x128xf32> -> vector<10x128xf32>
    %34 = arith.addf %26, %33 : vector<10x128xf32>
    %c0_14 = arith.constant 0 : index
    %c0_15 = arith.constant 0 : index
    %35 = vector.load %arg5[%c0_14, %c0_15] : memref<10x896xf32, #tpu.memory_space<vmem>>, vector<10x896xf32>
    %36 = tpu.iota {dimensions = array<i32: 0>} : vector<896x128xi32>
    %37 = vector.broadcast %3 : vector<1x128xi32> to vector<896x128xi32>
    %38 = arith.cmpi eq, %36, %37 : vector<896x128xi32>
    %39 = arith.extui %38 : vector<896x128xi1> to vector<896x128xi32>
    %40 = arith.sitofp %39 : vector<896x128xi32> to vector<896x128xf32>
    %cst_16 = arith.constant dense<0.000000e+00> : vector<10x128xf32>
    %41 = tpu.matmul %35, %40, %cst_16 {dimension_numbers = #tpu.dot_dimension_numbers<[1], [0], [0], [1], [0, 0, 1, 1], [], []>} : vector<10x896xf32>, vector<896x128xf32>, vector<10x128xf32> -> vector<10x128xf32>
    %42 = arith.addf %34, %41 : vector<10x128xf32>
    %c0_17 = arith.constant 0 : index
    %c0_18 = arith.constant 0 : index
    %43 = vector.load %arg6[%c0_17, %c0_18] : memref<10x128xf32, #tpu.memory_space<vmem>>, vector<10x128xf32>
    tpu.vector_store %arg6[%c0_17, %c0_18], %42 {strides = array<i32>} : memref<10x128xf32, #tpu.memory_space<vmem>>, vector<10x128xf32>,
    return
  }
  func.func @transform_0(%arg0: i32) -> (i32, i32) {
    %c0_i32 = arith.constant 0 : i32
    %c0_i32_0 = arith.constant 0 : i32
    return %c0_i32, %arg0 : i32, i32
  }
  func.func @transform_1(%arg0: i32) -> (i32, i32) {
    %c0_i32 = arith.constant 0 : i32
    %c0_i32_0 = arith.constant 0 : i32
    %c0_i32_1 = arith.constant 0 : i32
    return %c0_i32, %c0_i32_0 : i32, i32
  }
  func.func @transform_2(%arg0: i32) -> (i32, i32) {
    %c0_i32 = arith.constant 0 : i32
    %c0_i32_0 = arith.constant 0 : i32
    %c0_i32_1 = arith.constant 0 : i32
    return %c0_i32, %c0_i32_0 : i32, i32
  }
  func.func @transform_3(%arg0: i32) -> (i32, i32) {
    %c0_i32 = arith.constant 0 : i32
    %c0_i32_0 = arith.constant 0 : i32
    %c0_i32_1 = arith.constant 0 : i32
    return %c0_i32, %c0_i32_0 : i32, i32
  }
  func.func @transform_4(%arg0: i32) -> (i32, i32) {
    %c0_i32 = arith.constant 0 : i32
    %c0_i32_0 = arith.constant 0 : i32
    %c0_i32_1 = arith.constant 0 : i32
    return %c0_i32, %c0_i32_0 : i32, i32
  }
  func.func @transform_5(%arg0: i32) -> (i32, i32) {
    %c0_i32 = arith.constant 0 : i32
    %c0_i32_0 = arith.constant 0 : i32
    return %c0_i32, %arg0 : i32, i32
  }
}

</mosaic_0001>

<bundles_post_ra>
// kernel: tpu_custom_call.1
= control target key start
LH: loop header
LB: loop body
LE: loop exit
PB: predicated region body
PF: predicated region fallthrough
CT: control target
= control target key end

     0   :  { %10 = vsyncpa [#allocation3], 0  ;;  %s2705_s0 = inlined_call_operand.hbm [shape: s32[4,128], index: 0, kind: input, shape index: {}]   ;;  %s2706_s1 = inlined_call_operand.hbm [shape: f32[10,128], index: 1, kind: input, shape index: {}]   ;;  %s2707_s2 = inlined_call_operand.hbm [shape: f32[10,128], index: 2, kind: input, shape index: {}]   ;;  %s2708_s3 = inlined_call_operand.hbm [shape: f32[10,128], index: 3, kind: input, shape index: {}]   ;;  %s2709_s4 = inlined_call_operand.hbm [shape: f32[10,896], index: 4, kind: input, shape index: {}]   ;;  %s2710_s5 = inlined_call_operand.hbm [shape: f32[10,128], index: 5, kind: output, shape index: {}]  }
   0x1   :  { %11 = vsyncpa [#allocation6], 0 }
   0x2   :  { %12 = vsyncpa [#allocation9], 0 }
   0x3   :  { %13 = vsyncpa [#allocation4], 0  ;;  %s1891_s18 = smov [#allocation5]  }
   0x4   :  { %s29_s19 = sshll.u32 %s1891_s18, 4  ;;  %s30_s19 = int_to_ptr.vmem [resolvable:$true] %s29_s19 }
   0x5   :  { %s1771_s20 = scalar_lea.vmem %s30_s19, 256  ;;  %p1776_p1 = scmp.lt.s32.totalorder %s30_s19, %s30_s19 }
   0x6   :  { %p1772_p0 = scmp.ne.s32.totalorder %s30_s19, %s1771_s20  ;;  %p1777_p2 = scmp.lt.s32.totalorder %s1771_s20, %s1771_s20 }
   0x8   :  { %p1778_p3 = por %p1777_p2, %p1776_p1 }
   0xa   :  { %p1779_p4 = pnand %p1778_p3, %p1772_p0 }
   0xc   :  { %1782 = shalt.err (!%p1779_p4)
}
   0xd   :  { %s1892_s21 = smov 128   ;;  %s1893_s22 = smov 8  }
   0xe   :  { %35 = dma.hbm_to_vmem [thread:$0]  %s2706_s1, 256, %s30_s19, [#allocation6], %s1892_s21, %s1892_s21, %s1893_s22  }
   0xf   :  { %s1894_s25 = smov [#allocation8]   ;;  %s1895_s27 = smov [#allocation2]  }
  0x10   :  { %s53_s26 = sshll.u32 %s1894_s25, 4  ;;  %s20_s28 = sshll.u32 %s1895_s27, 4  ;;  %s54_s26 = int_to_ptr.vmem [resolvable:$true] %s53_s26  ;;  %s21_s28 = int_to_ptr.vmem [resolvable:$true] %s20_s28 }
  0x11   :  { %s1791_s29 = scalar_lea.vmem %s54_s26, 256  ;;  %p1796_p6 = scmp.lt.s32.totalorder %s54_s26, %s54_s26 }
  0x12   :  { %p1792_p5 = scmp.ne.s32.totalorder %s54_s26, %s1791_s29  ;;  %p1797_p7 = scmp.lt.s32.totalorder %s1791_s29, %s1791_s29 }
  0x14   :  { %p1798_p8 = por %p1797_p7, %p1796_p6 }
  0x16   :  { %p1799_p9 = pnand %p1798_p8, %p1792_p5 }
  0x18   :  { %1802 = shalt.err (!%p1799_p9)
}
  0x19   :  { %59 = dma.hbm_to_vmem [thread:$0]  %s2708_s3, 256, %s54_s26, [#allocation9], %s1892_s21, %s1892_s21, %s1893_s22  }
  0x1a   :  { %s1811_s1 = scalar_lea.vmem %s21_s28, 64  ;;  %p1816_p11 = scmp.lt.s32.totalorder %s21_s28, %s21_s28 }
  0x1b   :  { %p1812_p10 = scmp.ne.s32.totalorder %s21_s28, %s1811_s1  ;;  %p1817_p12 = scmp.lt.s32.totalorder %s1811_s1, %s1811_s1 }
  0x1d   :  { %p1818_p13 = por %p1817_p12, %p1816_p11 }
  0x1f   :  { %p1819_p0 = pnand %p1818_p13, %p1812_p10 }
  0x21   :  { %1822 = shalt.err (!%p1819_p0)
}
  0x22   :  { %23 = dma.hbm_to_vmem [thread:$0]  %s2705_s0, 64, %s21_s28, [#allocation3]  }
  0x23   :  { %s1896_s9 = smov [#allocation7]   ;;  %s1897_s11 = smov [#allocation10]  }
  0x24   :  { %s41_s10 = sshll.u32 %s1896_s9, 4  ;;  %s65_s12 = sshll.u32 %s1897_s11, 4  ;;  %s42_s10 = int_to_ptr.vmem [resolvable:$true] %s41_s10  ;;  %s66_s12 = int_to_ptr.vmem [resolvable:$true] %s65_s12 }
  0x25   :  { %s1831_s13 = scalar_lea.vmem %s42_s10, 256  ;;  %p1836_p2 = scmp.lt.s32.totalorder %s42_s10, %s42_s10 }
  0x26   :  { %p1832_p1 = scmp.ne.s32.totalorder %s42_s10, %s1831_s13  ;;  %p1837_p3 = scmp.lt.s32.totalorder %s1831_s13, %s1831_s13 }
  0x28   :  { %p1838_p4 = por %p1837_p3, %p1836_p2 }
  0x2a   :  { %p1839_p5 = pnand %p1838_p4, %p1832_p1 }
  0x2c   :  { %1842 = shalt.err (!%p1839_p5)
}
  0x2d   :  { %47 = dma.hbm_to_vmem [thread:$0]  %s2707_s2, 256, %s42_s10, [#allocation6], %s1892_s21, %s1892_s21, %s1893_s22  }
  0x2e   :  { %s1851_s0 = scalar_lea.vmem %s66_s12, 1792  ;;  %p1856_p7 = scmp.lt.s32.totalorder %s66_s12, %s66_s12 }
  0x2f   :  { %p1852_p6 = scmp.ne.s32.totalorder %s66_s12, %s1851_s0  ;;  %p1857_p8 = scmp.lt.s32.totalorder %s1851_s0, %s1851_s0 }
  0x31   :  { %p1858_p9 = por %p1857_p8, %p1856_p7 }
  0x33   :  { %p1859_p10 = pnand %p1858_p9, %p1852_p6 }
  0x35   :  { %1862 = shalt.err (!%p1859_p10)
}
  0x36   :  { %s1898_s15 = smov 896   ;;  %s1899_s16 = smov 56  }
  0x37   :  { %71 = dma.hbm_to_vmem [thread:$0]  %s2709_s4, 1792, %s66_s12, [#allocation9], %s1898_s15, %s1898_s15, %s1899_s16  }
  0x38   :  { %1883 = dma.done.wait [#allocation3], 64  }
  0x39   :  { %1884 = vsyncadd [#allocation3], 4294967232 }
  0x3a   :  { %1885 = dma.done.wait [#allocation6], 512  }
  0x3b   :  { %1886 = vsyncadd [#allocation6], 4294966784 }
  0x3c   :  { %1887 = dma.done.wait [#allocation9], 2048  }
  0x3d   :  { %1888 = vsyncadd [#allocation9], 4294965248  ;;  %v107_v0 = vlaneseq  ;;  %v1900_v1 = vmov 1   ;;  %v1901_v2 = vmov 0   ;;  %v1971_v7 = vld [vmem:[#allocation2] ss:$0 sm:$0xff] }
  0x3e   :  { %1761 = vset.pattern.permute.xlu1 %v1900_v1  ;;  %1760 = vset.pattern.permute.xlu0 %v1901_v2  ;;  %v1973_v8 = vld [vmem:[#allocation2 + $0x2] ss:$0 sm:$0xff]  ;;  %v1902_v10 = vmov 1.0   ;;  %v2126_v23 = vld [vmem:[#allocation2 + $0x3] ss:$0 sm:$0xff]  ;;  %v129_v25 = vld [vmem:[#allocation7] sm:$0xff] }
  0x3f   :  { %v1960_v3 = vshrl.u32 %v107_v0, 7  ;;  %v130_v27 = vld [vmem:[#allocation7 + $0x8] sm:$0x3]  ;;  %v277_v30 = vld [vmem:[#allocation8] sm:$0xff]  ;;  %1673 = vmatprep.mubr.f32.mxu0 %v129_v25  ;;  %v278_v32 = vld [vmem:[#allocation8 + $0x8] sm:$0x3] }
  0x40   :  { %1708 = vmatprep.mubr.f32.mxu1 %v277_v30  ;;  %v411_v25 = vld [vmem:[#allocation10 + $0x18] sm:$0xff]  ;;  %s1904_s2 = smov [#allocation11]  }
  0x41   :  { %v1963_v4 = vadd.s32 120, %v1960_v3  ;;  %v1966_v5 = vadd.s32 112, %v1960_v3  ;;  %v1969_v6 = vadd.s32 104, %v1960_v3  ;;  %v1976_v9 = vadd.s32 96, %v1960_v3  ;;  %s1167_s4 = sshll.u32 %s1904_s2, 4  ;;  %s1168_s4 = int_to_ptr.vmem [resolvable:$true] %s1167_s4 }
  0x42   :  { %v1995_v11 = vadd.s32 88, %v1960_v3  ;;  %v2006_v12 = vadd.s32 80, %v1960_v3  ;;  %v2017_v13 = vadd.s32 72, %v1960_v3  ;;  %v2028_v14 = vadd.s32 64, %v1960_v3  ;;  %s1863_s19 = scalar_lea.vmem %s1168_s4, 256  ;;  %p1868_p12 = scmp.lt.s32.totalorder %s1168_s4, %s1168_s4 }
  0x43   :  { %vm167_vm0 = vcmp.eq.s32.totalorder %v1963_v4, %v1971_v7  ;;  %vm298_vm1 = vcmp.eq.s32.totalorder %v1963_v4, %v1973_v8  ;;  %vm166_vm2 = vcmp.eq.s32.totalorder %v1966_v5, %v1971_v7  ;;  %vm297_vm3 = vcmp.eq.s32.totalorder %v1966_v5, %v1973_v8  ;;  %p1864_p11 = scmp.ne.s32.totalorder %s1168_s4, %s1863_s19  ;;  %p1869_p13 = scmp.lt.s32.totalorder %s1863_s19, %s1863_s19 }
  0x44   :  { %1641 = vmatprep.subr.msk.mxu0 %vm167_vm0, %v1902_v10  ;;  %1676 = vmatprep.subr.msk.mxu1 %vm298_vm1, %v1902_v10  ;;  %vm165_vm4 = vcmp.eq.s32.totalorder %v1969_v6, %v1971_v7  ;;  %vm296_vm5 = vcmp.eq.s32.totalorder %v1969_v6, %v1973_v8  ;;  %vm164_vm6 = vcmp.eq.s32.totalorder %v1976_v9, %v1971_v7  ;;  %v2039_v15 = vadd.s32 56, %v1960_v3 }
  0x45   :  { %1642 = vmatpush3.msk.msra.mxu0 %vm167_vm0, %v1902_v10  ;;  %1677 = vmatpush3.msk.msra.mxu1 %vm298_vm1, %v1902_v10  ;;  %vm295_vm7 = vcmp.eq.s32.totalorder %v1976_v9, %v1973_v8  ;;  %vm163_vm8 = vcmp.eq.s32.totalorder %v1995_v11, %v1971_v7  ;;  %vm294_vm9 = vcmp.eq.s32.totalorder %v1995_v11, %v1973_v8  ;;  %v2050_v16 = vadd.s32 48, %v1960_v3  ;;  %p1870_p0 = por %p1869_p13, %p1868_p12 }
  0x46   :  { %1643 = vmatprep.subr.msk.mxu0 %vm166_vm2, %v1902_v10  ;;  %1678 = vmatprep.subr.msk.mxu1 %vm297_vm3, %v1902_v10  ;;  %vm162_vm10 = vcmp.eq.s32.totalorder %v2006_v12, %v1971_v7  ;;  %vm293_vm11 = vcmp.eq.s32.totalorder %v2006_v12, %v1973_v8  ;;  %vm161_vm12 = vcmp.eq.s32.totalorder %v2017_v13, %v1971_v7  ;;  %v2061_v17 = vadd.s32 40, %v1960_v3 }
  0x47   :  { %1644 = vmatpush3.msk.msra.mxu0 %vm166_vm2, %v1902_v10  ;;  %1679 = vmatpush3.msk.msra.mxu1 %vm297_vm3, %v1902_v10  ;;  %vm292_vm13 = vcmp.eq.s32.totalorder %v2017_v13, %v1973_v8  ;;  %vm160_vm14 = vcmp.eq.s32.totalorder %v2028_v14, %v1971_v7  ;;  %vm291_vm15 = vcmp.eq.s32.totalorder %v2028_v14, %v1973_v8  ;;  %v2072_v18 = vadd.s32 32, %v1960_v3  ;;  %p1871_p1 = pnand %p1870_p0, %p1864_p11 }
  0x48   :  { %1645 = vmatprep.subr.msk.mxu0 %vm165_vm4, %v1902_v10  ;;  %1680 = vmatprep.subr.msk.mxu1 %vm296_vm5, %v1902_v10  ;;  %vm159_vm0 = vcmp.eq.s32.totalorder %v2039_v15, %v1971_v7  ;;  %vm290_vm1 = vcmp.eq.s32.totalorder %v2039_v15, %v1973_v8  ;;  %vm158_vm2 = vcmp.eq.s32.totalorder %v2050_v16, %v1971_v7  ;;  %v2083_v19 = vadd.s32 24, %v1960_v3 }
  0x49   :  { %1646 = vmatpush3.msk.msra.mxu0 %vm165_vm4, %v1902_v10  ;;  %1681 = vmatpush3.msk.msra.mxu1 %vm296_vm5, %v1902_v10  ;;  %vm289_vm3 = vcmp.eq.s32.totalorder %v2050_v16, %v1973_v8  ;;  %vm157_vm4 = vcmp.eq.s32.totalorder %v2061_v17, %v1971_v7  ;;  %vm288_vm5 = vcmp.eq.s32.totalorder %v2061_v17, %v1973_v8  ;;  %v2094_v20 = vadd.s32 16, %v1960_v3 }
  0x4a   :  { %1647 = vmatprep.subr.msk.mxu0 %vm164_vm6, %v1902_v10  ;;  %1682 = vmatprep.subr.msk.mxu1 %vm295_vm7, %v1902_v10  ;;  %v2105_v21 = vadd.s32 8, %v1960_v3  ;;  %v437_v22 = vadd.s32 248, %v1960_v3  ;;  %v469_v24 = vadd.s32 504, %v1960_v3  ;;  %v453_v26 = vadd.s32 376, %v1960_v3 }
  0x4b   :  { %1648 = vmatpush3.msk.msra.mxu0 %vm164_vm6, %v1902_v10  ;;  %1683 = vmatpush3.msk.msra.mxu1 %vm295_vm7, %v1902_v10  ;;  %vm156_vm6 = vcmp.eq.s32.totalorder %v2072_v18, %v1971_v7  ;;  %vm287_vm7 = vcmp.eq.s32.totalorder %v2072_v18, %v1973_v8  ;;  %v436_v28 = vadd.s32 240, %v1960_v3  ;;  %v468_v29 = vadd.s32 496, %v1960_v3 }
  0x4c   :  { %1649 = vmatprep.subr.msk.mxu0 %vm163_vm8, %v1902_v10  ;;  %1684 = vmatprep.subr.msk.mxu1 %vm294_vm9, %v1902_v10  ;;  %v452_v31 = vadd.s32 368, %v1960_v3  ;;  %v435_v33 = vadd.s32 232, %v1960_v3  ;;  %v467_v34 = vadd.s32 488, %v1960_v3  ;;  %v451_v35 = vadd.s32 360, %v1960_v3 }
  0x4d   :  { %1650 = vmatpush3.msk.msra.mxu0 %vm163_vm8, %v1902_v10  ;;  %1685 = vmatpush3.msk.msra.mxu1 %vm294_vm9, %v1902_v10  ;;  %vm155_vm8 = vcmp.eq.s32.totalorder %v2083_v19, %v1971_v7  ;;  %vm286_vm9 = vcmp.eq.s32.totalorder %v2083_v19, %v1973_v8  ;;  %v434_v36 = vadd.s32 224, %v1960_v3  ;;  %v466_v37 = vadd.s32 480, %v1960_v3 }
  0x4e   :  { %1651 = vmatprep.subr.msk.mxu0 %vm162_vm10, %v1902_v10  ;;  %1686 = vmatprep.subr.msk.mxu1 %vm293_vm11, %v1902_v10  ;;  %v450_v38 = vadd.s32 352, %v1960_v3  ;;  %v433_v39 = vadd.s32 216, %v1960_v3  ;;  %v465_v40 = vadd.s32 472, %v1960_v3  ;;  %v449_v41 = vadd.s32 344, %v1960_v3 }
  0x4f   :  { %1652 = vmatpush3.msk.msra.mxu0 %vm162_vm10, %v1902_v10  ;;  %1687 = vmatpush3.msk.msra.mxu1 %vm293_vm11, %v1902_v10  ;;  %vm154_vm10 = vcmp.eq.s32.totalorder %v2094_v20, %v1971_v7  ;;  %vm285_vm11 = vcmp.eq.s32.totalorder %v2094_v20, %v1973_v8  ;;  %v432_v42 = vadd.s32 208, %v1960_v3  ;;  %v464_v43 = vadd.s32 464, %v1960_v3 }
  0x50   :  { %1653 = vmatprep.subr.msk.mxu0 %vm161_vm12, %v1902_v10  ;;  %1688 = vmatprep.subr.msk.mxu1 %vm292_vm13, %v1902_v10  ;;  %v448_v44 = vadd.s32 336, %v1960_v3  ;;  %v431_v45 = vadd.s32 200, %v1960_v3  ;;  %v463_v46 = vadd.s32 456, %v1960_v3  ;;  %v447_v47 = vadd.s32 328, %v1960_v3 }
  0x51   :  { %1654 = vmatpush3.msk.msra.mxu0 %vm161_vm12, %v1902_v10  ;;  %1689 = vmatpush3.msk.msra.mxu1 %vm292_vm13, %v1902_v10  ;;  %vm153_vm12 = vcmp.eq.s32.totalorder %v2105_v21, %v1971_v7  ;;  %vm284_vm13 = vcmp.eq.s32.totalorder %v2105_v21, %v1973_v8  ;;  %v430_v48 = vadd.s32 192, %v1960_v3  ;;  %v462_v49 = vadd.s32 448, %v1960_v3 }
  0x52   :  { %1655 = vmatprep.subr.msk.mxu0 %vm160_vm14, %v1902_v10  ;;  %1690 = vmatprep.subr.msk.mxu1 %vm291_vm15, %v1902_v10  ;;  %v446_v50 = vadd.s32 320, %v1960_v3  ;;  %v429_v51 = vadd.s32 184, %v1960_v3  ;;  %v461_v52 = vadd.s32 440, %v1960_v3  ;;  %v445_v53 = vadd.s32 312, %v1960_v3 }
  0x53   :  { %1656 = vmatpush3.msk.msra.mxu0 %vm160_vm14, %v1902_v10  ;;  %1691 = vmatpush3.msk.msra.mxu1 %vm291_vm15, %v1902_v10  ;;  %vm152_vm14 = vcmp.eq.s32.totalorder %v1960_v3, %v1971_v7  ;;  %vm283_vm15 = vcmp.eq.s32.totalorder %v1960_v3, %v1973_v8  ;;  %v428_v54 = vadd.s32 176, %v1960_v3  ;;  %v460_v55 = vadd.s32 432, %v1960_v3 }
  0x54   :  { %1657 = vmatprep.subr.msk.mxu0 %vm159_vm0, %v1902_v10  ;;  %1692 = vmatprep.subr.msk.mxu1 %vm290_vm1, %v1902_v10  ;;  %v444_v56 = vadd.s32 304, %v1960_v3  ;;  %v427_v57 = vadd.s32 168, %v1960_v3  ;;  %v459_v58 = vadd.s32 424, %v1960_v3  ;;  %v443_v59 = vadd.s32 296, %v1960_v3 }
  0x55   :  { %1658 = vmatpush3.msk.msra.mxu0 %vm159_vm0, %v1902_v10  ;;  %1693 = vmatpush3.msk.msra.mxu1 %vm290_vm1, %v1902_v10  ;;  %vm553_vm0 = vcmp.eq.s32.totalorder %v437_v22, %v2126_v23  ;;  %vm585_vm1 = vcmp.eq.s32.totalorder %v469_v24, %v2126_v23  ;;  %v426_v60 = vadd.s32 160, %v1960_v3  ;;  %v458_v61 = vadd.s32 416, %v1960_v3 }
  0x56   :  { %1659 = vmatprep.subr.msk.mxu0 %vm158_vm2, %v1902_v10  ;;  %1694 = vmatprep.subr.msk.mxu1 %vm289_vm3, %v1902_v10  ;;  %v442_v62 = vadd.s32 288, %v1960_v3  ;;  %v425_v63 = vadd.s32 152, %v1960_v3  ;;  %v457_v0 = vadd.s32 408, %v1960_v3  ;;  %v441_v2 = vadd.s32 280, %v1960_v3 }
  0x57   :  { %1660 = vmatpush3.msk.msra.mxu0 %vm158_vm2, %v1902_v10  ;;  %1695 = vmatpush3.msk.msra.mxu1 %vm289_vm3, %v1902_v10  ;;  %vm537_vm2 = vcmp.eq.s32.totalorder %v1963_v4, %v2126_v23  ;;  %vm569_vm3 = vcmp.eq.s32.totalorder %v453_v26, %v2126_v23  ;;  %v424_v4 = vadd.s32 144, %v1960_v3  ;;  %v423_v7 = vadd.s32 136, %v1960_v3 }
  0x58   :  { %1661 = vmatprep.subr.msk.mxu0 %vm157_vm4, %v1902_v10  ;;  %1696 = vmatprep.subr.msk.mxu1 %vm288_vm5, %v1902_v10  ;;  %v455_v8 = vadd.s32 392, %v1960_v3  ;;  %v438_v22 = vadd.s32 256, %v1960_v3  ;;  %v485_v24 = vadd.s32 632, %v1960_v3  ;;  %v500_v26 = vadd.s32 752, %v1960_v3 }
  0x59   :  { %1662 = vmatpush3.msk.msra.mxu0 %vm157_vm4, %v1902_v10  ;;  %1697 = vmatpush3.msk.msra.mxu1 %vm288_vm5, %v1902_v10  ;;  %vm552_vm4 = vcmp.eq.s32.totalorder %v436_v28, %v2126_v23  ;;  %vm584_vm5 = vcmp.eq.s32.totalorder %v468_v29, %v2126_v23  ;;  %v408_v28 = vld [vmem:[#allocation10] sm:$0xff]  ;;  %v410_v29 = vld [vmem:[#allocation10 + $0x10] sm:$0xff]  ;;  %v484_v30 = vadd.s32 624, %v1960_v3 }
  0x5a   :  { %1663 = vmatprep.subr.msk.mxu0 %vm156_vm6, %v1902_v10  ;;  %1698 = vmatprep.subr.msk.mxu1 %vm287_vm7, %v1902_v10 }
  0x5b   :  { %1664 = vmatpush3.msk.msra.mxu0 %vm156_vm6, %v1902_v10  ;;  %1699 = vmatpush3.msk.msra.mxu1 %vm287_vm7, %v1902_v10  ;;  %vm536_vm6 = vcmp.eq.s32.totalorder %v1966_v5, %v2126_v23  ;;  %vm568_vm7 = vcmp.eq.s32.totalorder %v452_v31, %v2126_v23  ;;  %v456_v5 = vadd.s32 400, %v1960_v3  ;;  %v499_v31 = vadd.s32 744, %v1960_v3 }
  0x5c   :  { %1665 = vmatprep.subr.msk.mxu0 %vm155_vm8, %v1902_v10  ;;  %1700 = vmatprep.subr.msk.mxu1 %vm286_vm9, %v1902_v10 }
  0x5d   :  { %1666 = vmatpush3.msk.msra.mxu0 %vm155_vm8, %v1902_v10  ;;  %1701 = vmatpush3.msk.msra.mxu1 %vm286_vm9, %v1902_v10  ;;  %vm551_vm8 = vcmp.eq.s32.totalorder %v435_v33, %v2126_v23  ;;  %vm583_vm9 = vcmp.eq.s32.totalorder %v467_v34, %v2126_v23  ;;  %v483_v33 = vadd.s32 616, %v1960_v3  ;;  %v498_v34 = vadd.s32 736, %v1960_v3 }
  0x5e   :  { %1667 = vmatprep.subr.msk.mxu0 %vm154_vm10, %v1902_v10  ;;  %1702 = vmatprep.subr.msk.mxu1 %vm285_vm11, %v1902_v10 }
  0x5f   :  { %1668 = vmatpush3.msk.msra.mxu0 %vm154_vm10, %v1902_v10  ;;  %1703 = vmatpush3.msk.msra.mxu1 %vm285_vm11, %v1902_v10  ;;  %vm535_vm10 = vcmp.eq.s32.totalorder %v1969_v6, %v2126_v23  ;;  %vm567_vm11 = vcmp.eq.s32.totalorder %v451_v35, %v2126_v23  ;;  %v440_v6 = vadd.s32 272, %v1960_v3  ;;  %v514_v35 = vadd.s32 864, %v1960_v3 }
  0x60   :  { %1669 = vmatprep.subr.msk.mxu0 %vm153_vm12, %v1902_v10  ;;  %1704 = vmatprep.subr.msk.mxu1 %vm284_vm13, %v1902_v10 }
  0x61   :  { %1670 = vmatpush3.msk.msra.mxu0 %vm153_vm12, %v1902_v10  ;;  %1705 = vmatpush3.msk.msra.mxu1 %vm284_vm13, %v1902_v10  ;;  %vm550_vm12 = vcmp.eq.s32.totalorder %v434_v36, %v2126_v23  ;;  %vm582_vm13 = vcmp.eq.s32.totalorder %v466_v37, %v2126_v23  ;;  %v482_v36 = vadd.s32 608, %v1960_v3  ;;  %v497_v37 = vadd.s32 728, %v1960_v3 }
  0x62   :  { %1671 = vmatprep.subr.msk.mxu0 %vm152_vm14, %v1902_v10  ;;  %1706 = vmatprep.subr.msk.mxu1 %vm283_vm15, %v1902_v10 }
  0x63   :  { %1672 = vmatpush3.msk.msra.mxu0 %vm152_vm14, %v1902_v10  ;;  %1707 = vmatpush3.msk.msra.mxu1 %vm283_vm15, %v1902_v10  ;;  %vm534_vm14 = vcmp.eq.s32.totalorder %v1976_v9, %v2126_v23  ;;  %vm566_vm15 = vcmp.eq.s32.totalorder %v450_v38, %v2126_v23  ;;  %v439_v9 = vadd.s32 264, %v1960_v3  ;;  %v513_v38 = vadd.s32 856, %v1960_v3 }
  0x64   :  { %1674 = vmatmul.mubr.f32.vlgmr.msra.gmra.mxu0 %v130_v27  ;;  %1509 = vmatprep.subr.msk.mxu0 %vm553_vm0, %v1902_v10  ;;  %vm533_vm0 = vcmp.eq.s32.totalorder %v1995_v11, %v2126_v23  ;;  %v2392_v11 = vadd.s32 520, %v1960_v3  ;;  %v516_v27 = vadd.s32 880, %v1960_v3 }
  0x65   :  { %1547 = vmatprep.subr.msk.mxu1 %vm585_vm1, %v1902_v10  ;;  %1709 = vmatmul.mubr.f32.vlgmr.msra.gmra.mxu1 %v278_v32  ;;  %vm549_vm1 = vcmp.eq.s32.totalorder %v433_v39, %v2126_v23  ;;  %v515_v32 = vadd.s32 872, %v1960_v3  ;;  %v481_v39 = vadd.s32 600, %v1960_v3 }
  0x66   :  { %1510 = vmatpush3.msk.msra.mxu0 %vm537_vm2, %v1902_v10  ;;  %1548 = vmatpush3.msk.msra.mxu1 %vm569_vm3, %v1902_v10  ;;  %vm581_vm2 = vcmp.eq.s32.totalorder %v465_v40, %v2126_v23  ;;  %vm565_vm3 = vcmp.eq.s32.totalorder %v449_v41, %v2126_v23  ;;  %v496_v40 = vadd.s32 720, %v1960_v3  ;;  %v512_v41 = vadd.s32 848, %v1960_v3 }
  0x67   :  { %1511 = vmatprep.subr.msk.mxu0 %vm552_vm4, %v1902_v10  ;;  %1549 = vmatprep.subr.msk.mxu1 %vm584_vm5, %v1902_v10  ;;  %vm532_vm4 = vcmp.eq.s32.totalorder %v2006_v12, %v2126_v23  ;;  %vm548_vm5 = vcmp.eq.s32.totalorder %v432_v42, %v2126_v23  ;;  %v2395_v12 = vadd.s32 640, %v1960_v3  ;;  %v480_v42 = vadd.s32 592, %v1960_v3 }
  0x68   :  { %1512 = vmatpush3.msk.msra.mxu0 %vm536_vm6, %v1902_v10  ;;  %1550 = vmatpush3.msk.msra.mxu1 %vm568_vm7, %v1902_v10  ;;  %vm580_vm6 = vcmp.eq.s32.totalorder %v464_v43, %v2126_v23  ;;  %vm564_vm7 = vcmp.eq.s32.totalorder %v448_v44, %v2126_v23  ;;  %v495_v43 = vadd.s32 712, %v1960_v3  ;;  %v511_v44 = vadd.s32 840, %v1960_v3 }
  0x69   :  { %1513 = vmatprep.subr.msk.mxu0 %vm551_vm8, %v1902_v10  ;;  %1551 = vmatprep.subr.msk.mxu1 %vm583_vm9, %v1902_v10  ;;  %vm531_vm8 = vcmp.eq.s32.totalorder %v2017_v13, %v2126_v23  ;;  %vm547_vm9 = vcmp.eq.s32.totalorder %v431_v45, %v2126_v23  ;;  %v2398_v13 = vadd.s32 784, %v1960_v3  ;;  %v479_v45 = vadd.s32 584, %v1960_v3 }
  0x6a   :  { %1514 = vmatpush3.msk.msra.mxu0 %vm535_vm10, %v1902_v10  ;;  %1552 = vmatpush3.msk.msra.mxu1 %vm567_vm11, %v1902_v10  ;;  %vm579_vm10 = vcmp.eq.s32.totalorder %v463_v46, %v2126_v23  ;;  %vm563_vm11 = vcmp.eq.s32.totalorder %v447_v47, %v2126_v23  ;;  %v494_v46 = vadd.s32 704, %v1960_v3  ;;  %v510_v47 = vadd.s32 832, %v1960_v3 }
  0x6b   :  { %1515 = vmatprep.subr.msk.mxu0 %vm550_vm12, %v1902_v10  ;;  %1553 = vmatprep.subr.msk.mxu1 %vm582_vm13, %v1902_v10  ;;  %vm546_vm12 = vcmp.eq.s32.totalorder %v430_v48, %v2126_v23  ;;  %vm530_vm13 = vcmp.eq.s32.totalorder %v2028_v14, %v2126_v23  ;;  %v422_v14 = vadd.s32 128, %v1960_v3  ;;  %v478_v48 = vadd.s32 576, %v1960_v3 }
  0x6c   :  { %1516 = vmatpush3.msk.msra.mxu0 %vm534_vm14, %v1902_v10  ;;  %1554 = vmatpush3.msk.msra.mxu1 %vm566_vm15, %v1902_v10  ;;  %vm578_vm14 = vcmp.eq.s32.totalorder %v462_v49, %v2126_v23  ;;  %vm562_vm15 = vcmp.eq.s32.totalorder %v446_v50, %v2126_v23  ;;  %v493_v49 = vadd.s32 696, %v1960_v3  ;;  %v509_v50 = vadd.s32 824, %v1960_v3 }
  0x6d   :  { %1517 = vmatprep.subr.msk.mxu0 %vm549_vm1, %v1902_v10  ;;  %1555 = vmatprep.subr.msk.mxu1 %vm581_vm2, %v1902_v10  ;;  %vm545_vm1 = vcmp.eq.s32.totalorder %v429_v51, %v2126_v23  ;;  %vm577_vm2 = vcmp.eq.s32.totalorder %v461_v52, %v2126_v23  ;;  %v477_v51 = vadd.s32 568, %v1960_v3  ;;  %v492_v52 = vadd.s32 688, %v1960_v3 }
  0x6e   :  { %1518 = vmatpush3.msk.msra.mxu0 %vm533_vm0, %v1902_v10  ;;  %1556 = vmatpush3.msk.msra.mxu1 %vm565_vm3, %v1902_v10  ;;  %vm529_vm0 = vcmp.eq.s32.totalorder %v2039_v15, %v2126_v23  ;;  %vm561_vm3 = vcmp.eq.s32.totalorder %v445_v53, %v2126_v23  ;;  %v454_v15 = vadd.s32 384, %v1960_v3  ;;  %v508_v53 = vadd.s32 816, %v1960_v3 }
  0x6f   :  { %1519 = vmatprep.subr.msk.mxu0 %vm548_vm5, %v1902_v10  ;;  %1557 = vmatprep.subr.msk.mxu1 %vm580_vm6, %v1902_v10  ;;  %vm528_vm5 = vcmp.eq.s32.totalorder %v2050_v16, %v2126_v23  ;;  %vm576_vm6 = vcmp.eq.s32.totalorder %v460_v55, %v2126_v23  ;;  %v2410_v16 = vadd.s32 512, %v1960_v3  ;;  %v491_v55 = vadd.s32 680, %v1960_v3 }
  0x70   :  { %1520 = vmatpush3.msk.msra.mxu0 %vm532_vm4, %v1902_v10  ;;  %1558 = vmatpush3.msk.msra.mxu1 %vm564_vm7, %v1902_v10  ;;  %vm544_vm4 = vcmp.eq.s32.totalorder %v428_v54, %v2126_v23  ;;  %vm560_vm7 = vcmp.eq.s32.totalorder %v444_v56, %v2126_v23  ;;  %v476_v54 = vadd.s32 560, %v1960_v3  ;;  %v507_v56 = vadd.s32 808, %v1960_v3 }
  0x71   :  { %1521 = vmatprep.subr.msk.mxu0 %vm547_vm9, %v1902_v10  ;;  %1559 = vmatprep.subr.msk.mxu1 %vm579_vm10, %v1902_v10  ;;  %vm543_vm9 = vcmp.eq.s32.totalorder %v427_v57, %v2126_v23  ;;  %vm575_vm10 = vcmp.eq.s32.totalorder %v459_v58, %v2126_v23  ;;  %v475_v57 = vadd.s32 552, %v1960_v3  ;;  %v490_v58 = vadd.s32 672, %v1960_v3 }
  0x72   :  { %1522 = vmatpush3.msk.msra.mxu0 %vm531_vm8, %v1902_v10  ;;  %1560 = vmatpush3.msk.msra.mxu1 %vm563_vm11, %v1902_v10  ;;  %vm527_vm8 = vcmp.eq.s32.totalorder %v2061_v17, %v2126_v23  ;;  %vm559_vm11 = vcmp.eq.s32.totalorder %v443_v59, %v2126_v23  ;;  %v2413_v17 = vadd.s32 776, %v1960_v3  ;;  %v474_v59 = vadd.s32 544, %v1960_v3 }
  0x73   :  { %1523 = vmatprep.subr.msk.mxu0 %vm546_vm12, %v1902_v10  ;;  %1561 = vmatprep.subr.msk.mxu1 %vm578_vm14, %v1902_v10  ;;  %vm526_vm12 = vcmp.eq.s32.totalorder %v2072_v18, %v2126_v23  ;;  %vm574_vm14 = vcmp.eq.s32.totalorder %v458_v61, %v2126_v23  ;;  %v2428_v18 = vadd.s32 768, %v1960_v3  ;;  %v416_v61 = vld [vmem:[#allocation10 + $0x40] sm:$0x3] }
  0x74   :  { %1524 = vmatpush3.msk.msra.mxu0 %vm530_vm13, %v1902_v10  ;;  %1562 = vmatpush3.msk.msra.mxu1 %vm562_vm15, %v1902_v10  ;;  %vm542_vm13 = vcmp.eq.s32.totalorder %v426_v60, %v2126_v23  ;;  %vm558_vm15 = vcmp.eq.s32.totalorder %v442_v62, %v2126_v23  ;;  %v489_v60 = vadd.s32 664, %v1960_v3  ;;  %v473_v62 = vadd.s32 536, %v1960_v3 }
  0x75   :  { %1525 = vmatprep.subr.msk.mxu0 %vm545_vm1, %v1902_v10  ;;  %1563 = vmatprep.subr.msk.mxu1 %vm577_vm2, %v1902_v10  ;;  %vm573_vm1 = vcmp.eq.s32.totalorder %v457_v0, %v2126_v23  ;;  %vm525_vm2 = vcmp.eq.s32.totalorder %v2083_v19, %v2126_v23  ;;  %v501_v19 = vadd.s32 760, %v1960_v3  ;;  %v488_v0 = vadd.s32 656, %v1960_v3 }
  0x76   :  { %1526 = vmatpush3.msk.msra.mxu0 %vm529_vm0, %v1902_v10  ;;  %1564 = vmatpush3.msk.msra.mxu1 %vm561_vm3, %v1902_v10  ;;  %vm541_vm0 = vcmp.eq.s32.totalorder %v425_v63, %v2126_v23  ;;  %vm557_vm3 = vcmp.eq.s32.totalorder %v441_v2, %v2126_v23  ;;  %v418_v63 = vld [vmem:[#allocation10 + $0x50] sm:$0x3]  ;;  %v506_v2 = vadd.s32 800, %v1960_v3 }
  0x77   :  { %1527 = vmatprep.subr.msk.mxu0 %vm544_vm4, %v1902_v10  ;;  %1565 = vmatprep.subr.msk.mxu1 %vm576_vm6, %v1902_v10  ;;  %vm540_vm4 = vcmp.eq.s32.totalorder %v424_v4, %v2126_v23  ;;  %vm572_vm6 = vcmp.eq.s32.totalorder %v456_v5, %v2126_v23  ;;  %v472_v4 = vadd.s32 528, %v1960_v3  ;;  %v415_v5 = vld [vmem:[#allocation10 + $0x38] sm:$0x3] }
  0x78   :  { %1528 = vmatpush3.msk.msra.mxu0 %vm528_vm5, %v1902_v10  ;;  %1566 = vmatpush3.msk.msra.mxu1 %vm560_vm7, %v1902_v10  ;;  %vm524_vm5 = vcmp.eq.s32.totalorder %v2094_v20, %v2126_v23  ;;  %vm556_vm7 = vcmp.eq.s32.totalorder %v440_v6, %v2126_v23  ;;  %v409_v20 = vld [vmem:[#allocation10 + $0x8] sm:$0xff]  ;;  %v487_v6 = vadd.s32 648, %v1960_v3 }
  0x79   :  { %1529 = vmatprep.subr.msk.mxu0 %vm543_vm9, %v1902_v10  ;;  %1567 = vmatprep.subr.msk.mxu1 %vm575_vm10, %v1902_v10  ;;  %vm587_vm9 = vcmp.eq.s32.totalorder %v2392_v11, %v2126_v23  ;;  %vm602_vm10 = vcmp.eq.s32.totalorder %v2395_v12, %v2126_v23  ;;  %v420_v11 = vld [vmem:[#allocation10 + $0x60] sm:$0x3]  ;;  %v414_v12 = vld [vmem:[#allocation10 + $0x30] sm:$0xff] }
  0x7a   :  { %1530 = vmatpush3.msk.msra.mxu0 %vm527_vm8, %v1902_v10  ;;  %1568 = vmatpush3.msk.msra.mxu1 %vm559_vm11, %v1902_v10  ;;  %vm539_vm8 = vcmp.eq.s32.totalorder %v423_v7, %v2126_v23  ;;  %vm620_vm11 = vcmp.eq.s32.totalorder %v2398_v13, %v2126_v23  ;;  %v505_v7 = vadd.s32 792, %v1960_v3  ;;  %v88_v13 = vld [vmem:[#allocation2 + $0x1] sm:$0x1] }
  0x7b   :  { %1531 = vmatprep.subr.msk.mxu0 %vm542_vm13, %v1902_v10  ;;  %1569 = vmatprep.subr.msk.mxu1 %vm574_vm14, %v1902_v10  ;;  %vm586_vm13 = vcmp.eq.s32.totalorder %v2410_v16, %v2126_v23  ;;  %vm619_vm14 = vcmp.eq.s32.totalorder %v2413_v17, %v2126_v23  ;;  %v419_v16 = vld [vmem:[#allocation10 + $0x58] sm:$0x3] }
  0x7c   :  { %1532 = vmatpush3.msk.msra.mxu0 %vm526_vm12, %v1902_v10  ;;  %1570 = vmatpush3.msk.msra.mxu1 %vm558_vm15, %v1902_v10  ;;  %vm571_vm12 = vcmp.eq.s32.totalorder %v455_v8, %v2126_v23  ;;  %vm523_vm15 = vcmp.eq.s32.totalorder %v2105_v21, %v2126_v23  ;;  %v517_v21 = vadd.s32 888, %v1960_v3  ;;  %v417_v8 = vld [vmem:[#allocation10 + $0x48] sm:$0x3] }
  0x7d   :  { %1533 = vmatprep.subr.msk.mxu0 %vm541_vm0, %v1902_v10  ;;  %1571 = vmatprep.subr.msk.mxu1 %vm573_vm1, %v1902_v10  ;;  %vm555_vm0 = vcmp.eq.s32.totalorder %v439_v9, %v2126_v23  ;;  %vm618_vm1 = vcmp.eq.s32.totalorder %v2428_v18, %v2126_v23  ;;  %v91_v9 = vld [vmem:[#allocation5] sm:$0xff] }
  0x7e   :  { %1534 = vmatpush3.msk.msra.mxu0 %vm525_vm2, %v1902_v10  ;;  %1572 = vmatpush3.msk.msra.mxu1 %vm557_vm3, %v1902_v10  ;;  %vm538_vm2 = vcmp.eq.s32.totalorder %v422_v14, %v2126_v23  ;;  %vm570_vm3 = vcmp.eq.s32.totalorder %v454_v15, %v2126_v23  ;;  %v413_v14 = vld [vmem:[#allocation10 + $0x28] sm:$0xff]  ;;  %v412_v15 = vld [vmem:[#allocation10 + $0x20] sm:$0xff] }
  0x7f   :  { %1535 = vmatprep.subr.msk.mxu0 %vm540_vm4, %v1902_v10  ;;  %1573 = vmatprep.subr.msk.mxu1 %vm572_vm6, %v1902_v10  ;;  %vm522_vm4 = vcmp.eq.s32.totalorder %v1960_v3, %v2126_v23  ;;  %vm617_vm6 = vcmp.eq.s32.totalorder %v501_v19, %v2126_v23  ;;  %v421_v19 = vld [vmem:[#allocation10 + $0x68] sm:$0x3] }
  0x80   :  { %1536 = vmatpush3.msk.msra.mxu0 %vm524_vm5, %v1902_v10  ;;  %1574 = vmatpush3.msk.msra.mxu1 %vm556_vm7, %v1902_v10  ;;  %vm554_vm5 = vcmp.eq.s32.totalorder %v438_v22, %v2126_v23  ;;  %vm633_vm7 = vcmp.eq.s32.totalorder %v517_v21, %v2126_v23  ;;  %v92_v22 = vld [vmem:[#allocation5 + $0x8] sm:$0x3]  ;;  %v1903_v21 = vmov 0.0  }
  0x81   :  { %1537 = vmatprep.subr.msk.mxu0 %vm539_vm8, %v1902_v10  ;;  %1575 = vmatprep.subr.msk.mxu1 %vm571_vm12, %v1902_v10  ;;  %vm601_vm8 = vcmp.eq.s32.totalorder %v485_v24, %v2126_v23  ;;  %vm616_vm12 = vcmp.eq.s32.totalorder %v500_v26, %v2126_v23  ;;  %v109_v26 = vsub.s32 0, %v1960_v3 }
  0x82   :  { %1538 = vmatpush3.msk.msra.mxu0 %vm523_vm15, %v1902_v10  ;;  %1576 = vmatpush3.msk.msra.mxu1 %vm555_vm0, %v1902_v10  ;;  %vm632_vm15 = vcmp.eq.s32.totalorder %v516_v27, %v2126_v23  ;;  %vm600_vm0 = vcmp.eq.s32.totalorder %v484_v30, %v2126_v23 }
  0x83   :  { %1539 = vmatprep.subr.msk.mxu0 %vm538_vm2, %v1902_v10  ;;  %1577 = vmatprep.subr.msk.mxu1 %vm570_vm3, %v1902_v10  ;;  %vm615_vm2 = vcmp.eq.s32.totalorder %v499_v31, %v2126_v23  ;;  %vm631_vm3 = vcmp.eq.s32.totalorder %v515_v32, %v2126_v23 }
  0x84   :  { %1540 = vmatpush3.msk.msra.mxu0 %vm522_vm4, %v1902_v10  ;;  %922 = vmatprep.mubr.f32.mxu0 %v409_v20  ;;  %vm599_vm4 = vcmp.eq.s32.totalorder %v483_v33, %v2126_v23 }
  0x85   :  { %1578 = vmatpush3.msk.msra.mxu1 %vm554_vm5, %v1902_v10  ;;  %997 = vmatprep.mubr.f32.mxu1 %v411_v25  ;;  %vm614_vm5 = vcmp.eq.s32.totalorder %v498_v34, %v2126_v23 }
  0x86   :  { %923 = vmatmul.mubr.f32.vlgmr.msra.gmra.mxu0 %v408_v28  ;;  %998 = vmatmul.mubr.f32.vlgmr.msra.gmra.mxu1 %v410_v29 }
  0x87   :  { %1585 = vmatprep.subr.msk.mxu0 %vm617_vm6, %v1902_v10  ;;  %1711 = vmatprep.subr.msk.mxu1 %vm633_vm7, %v1902_v10  ;;  %vm630_vm6 = vcmp.eq.s32.totalorder %v514_v35, %v2126_v23 }
  0x88   :  { %1586 = vmatpush3.msk.msra.mxu0 %vm601_vm8, %v1902_v10  ;;  %1712 = vmatpush3.msk.msra.mxu1 %vm633_vm7, %v1902_v10  ;;  %vm598_vm7 = vcmp.eq.s32.totalorder %v482_v36, %v2126_v23  ;;  %vm613_vm8 = vcmp.eq.s32.totalorder %v497_v37, %v2126_v23 }
  0x89   :  { %1587 = vmatprep.subr.msk.mxu0 %vm616_vm12, %v1902_v10  ;;  %1713 = vmatprep.subr.msk.mxu1 %vm632_vm15, %v1902_v10  ;;  %vm629_vm12 = vcmp.eq.s32.totalorder %v513_v38, %v2126_v23 }
  0x8a   :  { %1588 = vmatpush3.msk.msra.mxu0 %vm600_vm0, %v1902_v10  ;;  %1714 = vmatpush3.msk.msra.mxu1 %vm632_vm15, %v1902_v10  ;;  %vm597_vm15 = vcmp.eq.s32.totalorder %v481_v39, %v2126_v23  ;;  %vm612_vm0 = vcmp.eq.s32.totalorder %v496_v40, %v2126_v23 }
  0x8b   :  { %1589 = vmatprep.subr.msk.mxu0 %vm615_vm2, %v1902_v10  ;;  %1715 = vmatprep.subr.msk.mxu1 %vm631_vm3, %v1902_v10  ;;  %vm628_vm2 = vcmp.eq.s32.totalorder %v512_v41, %v2126_v23 }
  0x8c   :  { %1590 = vmatpush3.msk.msra.mxu0 %vm599_vm4, %v1902_v10  ;;  %1716 = vmatpush3.msk.msra.mxu1 %vm631_vm3, %v1902_v10  ;;  %vm596_vm3 = vcmp.eq.s32.totalorder %v480_v42, %v2126_v23  ;;  %vm611_vm4 = vcmp.eq.s32.totalorder %v495_v43, %v2126_v23 }
  0x8d   :  { %1591 = vmatprep.subr.msk.mxu0 %vm614_vm5, %v1902_v10  ;;  %1717 = vmatprep.subr.msk.mxu1 %vm630_vm6, %v1902_v10  ;;  %vm627_vm5 = vcmp.eq.s32.totalorder %v511_v44, %v2126_v23 }
  0x8e   :  { %1592 = vmatpush3.msk.msra.mxu0 %vm598_vm7, %v1902_v10  ;;  %1718 = vmatpush3.msk.msra.mxu1 %vm630_vm6, %v1902_v10  ;;  %vm595_vm6 = vcmp.eq.s32.totalorder %v479_v45, %v2126_v23  ;;  %vm610_vm7 = vcmp.eq.s32.totalorder %v494_v46, %v2126_v23 }
  0x8f   :  { %1593 = vmatprep.subr.msk.mxu0 %vm613_vm8, %v1902_v10  ;;  %1719 = vmatprep.subr.msk.mxu1 %vm629_vm12, %v1902_v10  ;;  %vm626_vm8 = vcmp.eq.s32.totalorder %v510_v47, %v2126_v23 }
  0x90   :  { %1594 = vmatpush3.msk.msra.mxu0 %vm597_vm15, %v1902_v10  ;;  %1720 = vmatpush3.msk.msra.mxu1 %vm629_vm12, %v1902_v10  ;;  %vm594_vm12 = vcmp.eq.s32.totalorder %v478_v48, %v2126_v23  ;;  %vm609_vm15 = vcmp.eq.s32.totalorder %v493_v49, %v2126_v23 }
  0x91   :  { %1595 = vmatprep.subr.msk.mxu0 %vm612_vm0, %v1902_v10  ;;  %1721 = vmatprep.subr.msk.mxu1 %vm628_vm2, %v1902_v10  ;;  %vm625_vm0 = vcmp.eq.s32.totalorder %v509_v50, %v2126_v23 }
  0x92   :  { %1596 = vmatpush3.msk.msra.mxu0 %vm596_vm3, %v1902_v10  ;;  %1722 = vmatpush3.msk.msra.mxu1 %vm628_vm2, %v1902_v10  ;;  %vm593_vm2 = vcmp.eq.s32.totalorder %v477_v51, %v2126_v23  ;;  %vm608_vm3 = vcmp.eq.s32.totalorder %v492_v52, %v2126_v23 }
  0x93   :  { %1597 = vmatprep.subr.msk.mxu0 %vm611_vm4, %v1902_v10  ;;  %1723 = vmatprep.subr.msk.mxu1 %vm627_vm5, %v1902_v10  ;;  %vm624_vm4 = vcmp.eq.s32.totalorder %v508_v53, %v2126_v23 }
  0x94   :  { %1598 = vmatpush3.msk.msra.mxu0 %vm595_vm6, %v1902_v10  ;;  %1724 = vmatpush3.msk.msra.mxu1 %vm627_vm5, %v1902_v10  ;;  %vm592_vm5 = vcmp.eq.s32.totalorder %v476_v54, %v2126_v23  ;;  %vm607_vm6 = vcmp.eq.s32.totalorder %v491_v55, %v2126_v23 }
  0x95   :  { %1599 = vmatprep.subr.msk.mxu0 %vm610_vm7, %v1902_v10  ;;  %1725 = vmatprep.subr.msk.mxu1 %vm626_vm8, %v1902_v10  ;;  %vm623_vm7 = vcmp.eq.s32.totalorder %v507_v56, %v2126_v23 }
  0x96   :  { %1600 = vmatpush3.msk.msra.mxu0 %vm594_vm12, %v1902_v10  ;;  %1726 = vmatpush3.msk.msra.mxu1 %vm626_vm8, %v1902_v10  ;;  %vm591_vm8 = vcmp.eq.s32.totalorder %v475_v57, %v2126_v23  ;;  %vm606_vm12 = vcmp.eq.s32.totalorder %v490_v58, %v2126_v23 }
  0x97   :  { %1601 = vmatprep.subr.msk.mxu0 %vm609_vm15, %v1902_v10  ;;  %1727 = vmatprep.subr.msk.mxu1 %vm625_vm0, %v1902_v10  ;;  %vm590_vm15 = vcmp.eq.s32.totalorder %v474_v59, %v2126_v23 }
  0x98   :  { %1602 = vmatpush3.msk.msra.mxu0 %vm593_vm2, %v1902_v10  ;;  %1728 = vmatpush3.msk.msra.mxu1 %vm625_vm0, %v1902_v10  ;;  %vm605_vm0 = vcmp.eq.s32.totalorder %v489_v60, %v2126_v23  ;;  %vm589_vm2 = vcmp.eq.s32.totalorder %v473_v62, %v2126_v23 }
  0x99   :  { %1603 = vmatprep.subr.msk.mxu0 %vm608_vm3, %v1902_v10  ;;  %1729 = vmatprep.subr.msk.mxu1 %vm624_vm4, %v1902_v10  ;;  %vm604_vm3 = vcmp.eq.s32.totalorder %v488_v0, %v2126_v23 }
  0x9a   :  { %1604 = vmatpush3.msk.msra.mxu0 %vm592_vm5, %v1902_v10  ;;  %1730 = vmatpush3.msk.msra.mxu1 %vm624_vm4, %v1902_v10  ;;  %vm622_vm4 = vcmp.eq.s32.totalorder %v506_v2, %v2126_v23  ;;  %vm588_vm5 = vcmp.eq.s32.totalorder %v472_v4, %v2126_v23 }
  0x9b   :  { %1605 = vmatprep.subr.msk.mxu0 %vm607_vm6, %v1902_v10  ;;  %1731 = vmatprep.subr.msk.mxu1 %vm623_vm7, %v1902_v10  ;;  %vm603_vm6 = vcmp.eq.s32.totalorder %v487_v6, %v2126_v23 }
  0x9c   :  { %1606 = vmatpush3.msk.msra.mxu0 %vm591_vm8, %v1902_v10  ;;  %927 = vmatprep.mubr.f32.mxu0 %v416_v61  ;;  %vm621_vm8 = vcmp.eq.s32.totalorder %v505_v7, %v2126_v23 }
  0x9d   :  { %1607 = vmatprep.subr.msk.mxu0 %vm606_vm12, %v1902_v10  ;;  %1002 = vmatprep.mubr.f32.mxu1 %v418_v63 }
  0x9e   :  { %1608 = vmatpush3.msk.msra.mxu0 %vm590_vm15, %v1902_v10  ;;  %1732 = vmatpush3.msk.msra.mxu1 %vm623_vm7, %v1902_v10 }
  0x9f   :  { %1609 = vmatprep.subr.msk.mxu0 %vm605_vm0, %v1902_v10  ;;  %928 = vmatmul.mubr.f32.gmra.mxu0 %v415_v5 }
  0xa0   :  { %1610 = vmatpush3.msk.msra.mxu0 %vm589_vm2, %v1902_v10  ;;  %1003 = vmatmul.mubr.f32.gmra.mxu1 %v417_v8 }
  0xa1   :  { %1611 = vmatprep.subr.msk.mxu0 %vm604_vm3, %v1902_v10  ;;  %1733 = vmatprep.subr.msk.mxu1 %vm622_vm4, %v1902_v10 }
  0xa2   :  { %1612 = vmatpush3.msk.msra.mxu0 %vm588_vm5, %v1902_v10  ;;  %1734 = vmatpush3.msk.msra.mxu1 %vm622_vm4, %v1902_v10 }
  0xa3   :  { %1613 = vmatprep.subr.msk.mxu0 %vm603_vm6, %v1902_v10  ;;  %1735 = vmatprep.subr.msk.mxu1 %vm621_vm8, %v1902_v10 }
  0xa4   :  { %1614 = vmatpush3.msk.msra.mxu0 %vm587_vm9, %v1902_v10  ;;  %1736 = vmatpush3.msk.msra.mxu1 %vm621_vm8, %v1902_v10  ;;  %vm93_vm9 = vcmp.eq.s32.totalorder %v88_v13, 1 }
  0xa5   :  { %114 = vperm.xlu1 %1761, %v91_v9   ;;  %99 = vperm.xlu0 %1760, %v91_v9   ;;  %v1181_v20 = vsel %vm93_vm9, 1.0, %v1903_v21 }
  0xa6   :  { %1615 = vmatprep.subr.msk.mxu0 %vm602_vm10, %v1902_v10  ;;  %1737 = vmatprep.subr.msk.mxu1 %vm620_vm11, %v1902_v10  ;;  %v96_v27 = vsub.f32 1.0, %v1181_v20  ;;  %v124_v23 = vrot.slane %v1181_v20, %v109_v26 }
  0xa7   :  { %1616 = vmatpush3.msk.msra.mxu0 %vm586_vm13, %v1902_v10  ;;  %1072 = vmatprep.mubr.f32.mxu0 %v413_v14 }
  0xa8   :  { %1738 = vmatpush3.msk.msra.mxu1 %vm620_vm11, %v1902_v10  ;;  %1073 = vmatmul.mubr.f32.vlgmr.msra.gmra.mxu0 %v412_v15  ;;  %v110_v18 = vrot.slane %v96_v27, %v109_v26 }
  0xa9   :  { %1739 = vmatprep.subr.msk.mxu1 %vm619_vm14, %v1902_v10  ;;  %118 = vperm.xlu1 %1761, %v92_v22  }
  0xaa   :  { %1740 = vmatpush3.msk.msra.mxu1 %vm619_vm14, %v1902_v10  ;;  %104 = vperm.xlu0 %1760, %v92_v22  }
  0xab   :  { %1741 = vmatprep.subr.msk.mxu1 %vm618_vm1, %v1902_v10  ;;  %1077 = vmatprep.mubr.f32.mxu0 %v420_v11 }
  0xac   :  { %1742 = vmatpush3.msk.msra.mxu1 %vm618_vm1, %v1902_v10  ;;  %1743 = vmatprep.mubr.f32.mxu1 %v414_v12 }
  0xad   :  { %1078 = vmatmul.mubr.f32.gmra.mxu0 %v419_v16  ;;  %1744 = vmatmul.mubr.f32.vlgmr.msra.gmra.mxu1 %v421_v19 }
  0xae   :  { %1762 = vset.pattern.permute.xlu0 %v1900_v1 }
 0x120   :  { %v115_v30 = vpop.permute.xlu1 %114  ;;  %v100_v10 = vpop.permute.xlu0 %99 }
 0x121   :  { %v125_v1 = vmul.f32 %v124_v23, %v115_v30  ;;  %v111_v34 = vmul.f32 %v110_v18, %v100_v10 }
 0x123   :  { %v127_v40 = vadd.f32 %v125_v1, %v111_v34 }
 0x124   :  { %v1675_v17 = vpop.f32.mrf.mxu0  ;;  %v119_v36 = vpop.permute.xlu1 %118 }
 0x125   :  { %v1710_v24 = vpop.f32.mrf.mxu1  ;;  %v105_v37 = vpop.permute.xlu0 %104  ;;  %v126_v42 = vmul.f32 %v124_v23, %v119_v36 }
 0x126   :  { %v266_v25 = vpop.f32.mrf.mxu0  ;;  %v112_v43 = vmul.f32 %v110_v18, %v105_v37 }
 0x127   :  { %v397_v29 = vpop.f32.mrf.mxu1  ;;  %v275_v47 = vadd.f32 %v266_v25, %v127_v40 }
 0x128   :  { %v128_v50 = vadd.f32 %v126_v42, %v112_v43 }
 0x129   :  { %v406_v56 = vadd.f32 %v397_v29, %v275_v47 }
 0x12a   :  { %v276_v59 = vadd.f32 %v1675_v17, %v128_v50 }
 0x12c   :  { %v407_v2 = vadd.f32 %v1710_v24, %v276_v59 }
 0x146   :  { %v1541_v28 = vpop.f32.mrf.mxu0  ;;  %v1579_v31 = vpop.f32.mrf.mxu1 }
 0x148   :  { %v1542_v32 = vpop.f32.mrf.mxu0  ;;  %v1580_v35 = vpop.f32.mrf.mxu1 }
 0x149   :  { %v1543_v41 = vadd.f32 %v1542_v32, %v1541_v28  ;;  %v1581_v3 = vadd.f32 %v1580_v35, %v1579_v31 }
 0x14b   :  { %v1000_v48 = vadd.f32 %v1581_v3, %v1543_v41 }
 0x15f   :  { %v1544_v33 = vpop.f32.mrf.mxu0 }
 0x160   :  { %v1582_v38 = vpop.f32.mrf.mxu1 }
 0x161   :  { %v1545_v39 = vpop.f32.mrf.mxu0 }
 0x162   :  { %v1583_v45 = vpop.f32.mrf.mxu1  ;;  %v1546_v51 = vadd.f32 %v1545_v39, %v1544_v33 }
 0x163   :  { %v1584_v52 = vadd.f32 %v1583_v45, %v1582_v38 }
 0x165   :  { %v1005_v60 = vadd.f32 %v1584_v52, %v1546_v51 }
 0x168   :  { %v1617_v44 = vpop.f32.mrf.mxu0 }
 0x16a   :  { %v1618_v46 = vpop.f32.mrf.mxu0 }
 0x16b   :  { %v1619_v49 = vadd.f32 %v1618_v46, %v1617_v44 }
 0x16d   :  { %v1620_v53 = vpop.f32.mrf.mxu0  ;;  %v1745_v54 = vpop.f32.mrf.mxu1  ;;  %v1075_v55 = vadd.f32 %v1619_v49, %v1000_v48 }
 0x16f   :  { %v1621_v57 = vpop.f32.mrf.mxu0  ;;  %v1149_v58 = vpop.f32.mrf.mxu1 }
 0x170   :  { %v1622_v61 = vadd.f32 %v1621_v57, %v1620_v53  ;;  %v1150_v62 = vadd.f32 %v1149_v58, %v1075_v55 }
 0x172   :  { %v1080_v63 = vadd.f32 %v1622_v61, %v1005_v60  ;;  %v1158_v0 = vadd.f32 %v1150_v62, %v406_v56 }
 0x174   :  { %v1155_v4 = vadd.f32 %v1745_v54, %v1080_v63  ;;  %1160 = vst [vmem:[#allocation11] sm:$0xff] %v1158_v0 }
 0x176   :  { %v1159_v5 = vadd.f32 %v1155_v4, %v407_v2 }
 0x178   :  { %1161 = vst [vmem:[#allocation11 + $0x8] sm:$0x3] %v1159_v5 }
 0x179   :  { %1874 = shalt.err (!%p1871_p1)
}
 0x17a   :  { %1173 = dma.vmem_to_hbm [thread:$0]  %s1168_s4, 256, %s2710_s5, [#allocation4], %s1892_s21, %s1892_s21, %s1893_s22  }
 0x17b   :  { %1889 = dma.done.wait [#allocation4], 256  }
 0x17c   :  { %1890 = vsyncadd [#allocation4], 4294967040 }
 0x17d   :  { %1177 = vsyncpa [#allocation3], 1 }
 0x17e   :  { %1178 = vsyncpa [#allocation6], 1 }
 0x17f   :  { %1179 = vsyncpa [#allocation9], 1 }
 0x180   :  { %1180 = vsyncpa [#allocation4], 1 }

</bundles_post_ra>
